<compile_context>
chip_gen: v7x
topology: tpu7x:2x2x1
jax: 0.10.0
libtpu: 0.0.40
codegen_flags: <defaults>
</compile_context>

<pallas_src>
import jax
import jax.numpy as jnp
from jax.experimental import pallas as pl
from jax.experimental.pallas import tpu as pltpu


def _critic_kernel(s_ref, a_ref, w1s_ref, w1a_ref, b1_ref,
                   w2_ref, b2_ref, w3_ref, b3_ref, o_ref):
    # ---- layer 1: split-W1 matmul replaces concat([states, actions], 1) ----
    s = s_ref[...].astype(jnp.bfloat16)
    a = a_ref[...].astype(jnp.bfloat16)
    h1 = jnp.dot(s, w1s_ref[...], preferred_element_type=jnp.float32)
    h1 = h1 + jnp.dot(a, w1a_ref[...], preferred_element_type=jnp.float32)
    # f32 bias + ReLU, then store the intermediate as bf16 so the (tb, 256)
    # temp that is re-read by the layer-2 matmul costs half the vst/vld bytes.
    h1 = jnp.maximum(h1 + b1_ref[...], 0.0).astype(jnp.bfloat16)

    # ---- layer 2: bf16 MXU matmul, f32 accumulation ----
    h2 = jnp.dot(h1, w2_ref[...], preferred_element_type=jnp.float32)
    h2 = jnp.maximum(h2 + b2_ref[...], 0.0)

    # ---- layer 3: N=1, so use VPU multiply + XLU lane reduce (not MXU) ----
    q = jnp.sum(h2 * w3_ref[...], axis=-1, keepdims=True) + b3_ref[0, 0]
    o_ref[...] = q.astype(o_ref.dtype)


def pack_critic_params(params, total_state_dim):
    """One-time (init-time) weight packing so the forward path launches no
    per-call preprocessing ops.  Returns the tuple consumed by critic_forward."""
    w1, b1, w2, b2, w3, b3 = params
    S = total_state_dim
    w1s = w1[:S].astype(jnp.bfloat16)              # (S, 256)
    w1a = w1[S:].astype(jnp.bfloat16)              # (A, 256)
    b1r = b1.reshape(1, -1).astype(jnp.float32)    # (1, 256)
    w2b = w2.astype(jnp.bfloat16)                  # (256, 256)
    b2r = b2.reshape(1, -1).astype(jnp.float32)    # (1, 256)
    w3r = w3.reshape(1, -1).astype(jnp.float32)    # (1, 256)  VPU-side, f32
    b3s = b3.reshape(1, 1).astype(jnp.float32)     # (1, 1)    scalar -> SMEM
    return (w1s, w1a, b1r, w2b, b2r, w3r, b3s)


def _round_up(x, m):
    return (x + m - 1) // m * m


def _pick_batch_tile(batch, max_tile):
    """Pick a batch tile that (a) is a multiple of 8 (or the full batch),
    (b) yields >= 2 and preferably an even number of grid steps so both v7x
    TensorCores get work, and (c) caps the working set via max_tile."""
    if batch <= 16:                       # too small to split usefully
        return batch
    steps = max(2, pl.cdiv(batch, max_tile))
    if steps % 2:                         # even step count -> no straggler TC
        steps += 1
    return min(max_tile, _round_up(pl.cdiv(batch, steps), 8))


def critic_forward(states, actions, packed_params, *, max_batch_tile=2048):
    """Fused Critic forward. states: (B, S), actions: (B, A) -> (B, 1).

    `packed_params` must come from `pack_critic_params` (done once at init)."""
    w1s, w1a, b1, w2b, b2, w3r, b3s = packed_params
    B, S = states.shape
    A = actions.shape[1]

    tb = _pick_batch_tile(B, max_batch_tile)
    grid = (pl.cdiv(B, tb),)

    def weight_spec(arr):
        return pl.BlockSpec(arr.shape, lambda i: (0,) * arr.ndim)

    in_specs = [
        pl.BlockSpec((tb, S), lambda i: (i, 0)),            # states tile
        pl.BlockSpec((tb, A), lambda i: (i, 0)),            # actions tile
        weight_spec(w1s),
        weight_spec(w1a),
        weight_spec(b1),
        weight_spec(w2b),
        weight_spec(b2),
        weight_spec(w3r),
        pl.BlockSpec(memory_space=pltpu.MemorySpace.SMEM),  # b3 scalar
    ]
    out_specs = pl.BlockSpec((tb, 1), lambda i: (i, 0))

    return pl.pallas_call(
        _critic_kernel,
        out_shape=jax.ShapeDtypeStruct((B, 1), jnp.float32),
        grid=grid,
        in_specs=in_specs,
        out_specs=out_specs,
        compiler_params=pltpu.CompilerParams(
            dimension_semantics=("parallel",)),
    )(states, actions, w1s, w1a, b1, w2b, b2, w3r, b3s)


def init_critic_params(key, total_state_dim, total_action_dim):
    """Deterministic init mimicking PyTorch default uniform(-1/sqrt(fan_in), ...)."""
    d_in = total_state_dim + total_action_dim
    dims = [(d_in, 256), (256, 256), (256, 1)]
    params = []
    for (fan_in, fan_out) in dims:
        key, kw, kb = jax.random.split(key, 3)
        bound = 1.0 / jnp.sqrt(float(fan_in))
        w = jax.random.uniform(kw, (fan_in, fan_out), jnp.float32, -bound, bound)
        b = jax.random.uniform(kb, (1, fan_out), jnp.float32, -bound, bound)
        params += [w, b]
    return tuple(params)


def critic_ref(states, actions, params):
    """Pure-JAX f32 reference for correctness checking."""
    w1, b1, w2, b2, w3, b3 = params
    x = jnp.concatenate([states, actions], axis=1)
    h1 = jnp.maximum(x @ w1 + b1, 0.0)
    h2 = jnp.maximum(h1 @ w2 + b2, 0.0)
    return h2 @ w3 + b3


if __name__ == "__main__":
    total_state_dim = 24   # e.g. 3 agents x 8-dim observation
    total_action_dim = 6   # e.g. 3 agents x 2-dim action

    key = jax.random.PRNGKey(0)
    k_s, k_a, k_p = jax.random.split(key, 3)
    params = init_critic_params(k_p, total_state_dim, total_action_dim)
    # Hoisted out of the call path: pack / cast weights exactly once.
    packed = pack_critic_params(params, total_state_dim)

    # --- small-batch check (single block, full-extent tile) ---
    batch = 8
    states = jax.random.normal(k_s, (batch, total_state_dim), jnp.float32)
    actions = jax.random.normal(k_a, (batch, total_action_dim), jnp.float32)
    out = jax.block_until_ready(critic_forward(states, actions, packed))
    ref = critic_ref(states, actions, params)
    assert out.shape == (batch, 1), out.shape
    # bf16 matmul operands + bf16 h1 intermediate (f32 accumulation) -> loose tol
    assert jnp.allclose(out, ref, atol=5e-2, rtol=5e-2), "small-batch mismatch"

    # --- larger batch: exercises the tiled / pipelined, 2-step grid path ---
    big = 1024
    k_s2, k_a2 = jax.random.split(jax.random.PRNGKey(1))
    states_b = jax.random.normal(k_s2, (big, total_state_dim), jnp.float32)
    actions_b = jax.random.normal(k_a2, (big, total_action_dim), jnp.float32)
    out_b = jax.block_until_ready(critic_forward(states_b, actions_b, packed))
    ref_b = critic_ref(states_b, actions_b, params)
    assert out_b.shape == (big, 1), out_b.shape
    assert jnp.allclose(out_b, ref_b, atol=5e-2, rtol=5e-2), "tiled-batch mismatch"

    print("KERNEL_OK")
</pallas_src>

<mosaic_0001>
module attributes {stable_mosaic.version = 11 : i64} {
  func.func @_critic_kernel(%arg0: i32, %arg1: memref<8x24xf32, #tpu.memory_space<vmem>>, %arg2: memref<8x6xf32, #tpu.memory_space<vmem>>, %arg3: memref<24x256xbf16, #tpu.memory_space<vmem>>, %arg4: memref<6x256xbf16, #tpu.memory_space<vmem>>, %arg5: memref<1x256xf32, #tpu.memory_space<vmem>>, %arg6: memref<256x256xbf16, #tpu.memory_space<vmem>>, %arg7: memref<1x256xf32, #tpu.memory_space<vmem>>, %arg8: memref<1x256xf32, #tpu.memory_space<vmem>>, %arg9: memref<1x1xf32, #tpu.memory_space<smem>>, %arg10: memref<8x1xf32, #tpu.memory_space<vmem>>) attributes {dimension_semantics = [#tpu.dimension_semantics<parallel>], iteration_bounds = array<i64: 1>, scalar_prefetch = 0 : i64, scratch_operands = 0 : i64, tpu.core_type = #tpu.core_type<tc>, window_params = [{transform_indices = @transform_0, window_bounds = array<i64: 8, 24>}, {transform_indices = @transform_1, window_bounds = array<i64: 8, 6>}, {pipeline_mode = #tpu.pipeline_mode<synchronous>, transform_indices = @transform_2, window_bounds = array<i64: 24, 256>}, {pipeline_mode = #tpu.pipeline_mode<synchronous>, transform_indices = @transform_3, window_bounds = array<i64: 6, 256>}, {pipeline_mode = #tpu.pipeline_mode<synchronous>, transform_indices = @transform_4, window_bounds = array<i64: 1, 256>}, {pipeline_mode = #tpu.pipeline_mode<synchronous>, transform_indices = @transform_5, window_bounds = array<i64: 256, 256>}, {pipeline_mode = #tpu.pipeline_mode<synchronous>, transform_indices = @transform_6, window_bounds = array<i64: 1, 256>}, {pipeline_mode = #tpu.pipeline_mode<synchronous>, transform_indices = @transform_7, window_bounds = array<i64: 1, 256>}, {transform_indices = @transform_8, window_bounds = array<i64: 1, 1>}, {transform_indices = @transform_9, window_bounds = array<i64: 8, 1>}]} {
    %c0 = arith.constant 0 : index
    %c0_0 = arith.constant 0 : index
    %0 = vector.load %arg1[%c0, %c0_0] : memref<8x24xf32, #tpu.memory_space<vmem>>, vector<8x24xf32>
    %1 = arith.truncf %0 : vector<8x24xf32> to vector<8x24xbf16>
    %c0_1 = arith.constant 0 : index
    %c0_2 = arith.constant 0 : index
    %2 = vector.load %arg2[%c0_1, %c0_2] : memref<8x6xf32, #tpu.memory_space<vmem>>, vector<8x6xf32>
    %3 = arith.truncf %2 : vector<8x6xf32> to vector<8x6xbf16>
    %c0_3 = arith.constant 0 : index
    %c0_4 = arith.constant 0 : index
    %4 = vector.load %arg3[%c0_3, %c0_4] : memref<24x256xbf16, #tpu.memory_space<vmem>>, vector<24x256xbf16>
    %cst = arith.constant dense<0.000000e+00> : vector<8x256xf32>
    %5 = tpu.matmul %1, %4, %cst {dimension_numbers = #tpu.dot_dimension_numbers<[1], [0], [0], [1], [0, 0, 1, 1], [], []>} : vector<8x24xbf16>, vector<24x256xbf16>, vector<8x256xf32> -> vector<8x256xf32>
    %c0_5 = arith.constant 0 : index
    %c0_6 = arith.constant 0 : index
    %6 = vector.load %arg4[%c0_5, %c0_6] : memref<6x256xbf16, #tpu.memory_space<vmem>>, vector<6x256xbf16>
    %cst_7 = arith.constant dense<0.000000e+00> : vector<8x256xf32>
    %7 = tpu.matmul %3, %6, %cst_7 {dimension_numbers = #tpu.dot_dimension_numbers<[1], [0], [0], [1], [0, 0, 1, 1], [], []>} : vector<8x6xbf16>, vector<6x256xbf16>, vector<8x256xf32> -> vector<8x256xf32>
    %8 = arith.addf %5, %7 : vector<8x256xf32>
    %c0_8 = arith.constant 0 : index
    %c0_9 = arith.constant 0 : index
    %9 = vector.load %arg5[%c0_8, %c0_9] : memref<1x256xf32, #tpu.memory_space<vmem>>, vector<1x256xf32>
    %10 = vector.broadcast %9 : vector<1x256xf32> to vector<8x256xf32>
    %11 = arith.addf %8, %10 : vector<8x256xf32>
    %cst_10 = arith.constant 0.000000e+00 : f32
    %12 = vector.broadcast %cst_10 : f32 to vector<8x256xf32>
    %13 = arith.maximumf %11, %12 : vector<8x256xf32>
    %14 = arith.truncf %13 : vector<8x256xf32> to vector<8x256xbf16>
    %c0_11 = arith.constant 0 : index
    %c0_12 = arith.constant 0 : index
    %15 = vector.load %arg6[%c0_11, %c0_12] : memref<256x256xbf16, #tpu.memory_space<vmem>>, vector<256x256xbf16>
    %cst_13 = arith.constant dense<0.000000e+00> : vector<8x256xf32>
    %16 = tpu.matmul %14, %15, %cst_13 {dimension_numbers = #tpu.dot_dimension_numbers<[1], [0], [0], [1], [0, 0, 1, 1], [], []>} : vector<8x256xbf16>, vector<256x256xbf16>, vector<8x256xf32> -> vector<8x256xf32>
    %c0_14 = arith.constant 0 : index
    %c0_15 = arith.constant 0 : index
    %17 = vector.load %arg7[%c0_14, %c0_15] : memref<1x256xf32, #tpu.memory_space<vmem>>, vector<1x256xf32>
    %18 = vector.broadcast %17 : vector<1x256xf32> to vector<8x256xf32>
    %19 = arith.addf %16, %18 : vector<8x256xf32>
    %cst_16 = arith.constant 0.000000e+00 : f32
    %20 = vector.broadcast %cst_16 : f32 to vector<8x256xf32>
    %21 = arith.maximumf %19, %20 : vector<8x256xf32>
    %c0_17 = arith.constant 0 : index
    %c0_18 = arith.constant 0 : index
    %22 = vector.load %arg8[%c0_17, %c0_18] : memref<1x256xf32, #tpu.memory_space<vmem>>, vector<1x256xf32>
    %23 = vector.broadcast %22 : vector<1x256xf32> to vector<8x256xf32>
    %24 = arith.mulf %21, %23 : vector<8x256xf32>
    %cst_19 = arith.constant dense<0.000000e+00> : vector<8xf32>
    %25 = vector.multi_reduction <add>, %24, %cst_19 [1] : vector<8x256xf32> to vector<8xf32>
    %26 = vector.shape_cast %25 : vector<8xf32> to vector<8x1xf32>
    %c0_20 = arith.constant 0 : index
    %c0_21 = arith.constant 0 : index
    %27 = memref.load %arg9[%c0_20, %c0_21] : memref<1x1xf32, #tpu.memory_space<smem>>
    %28 = vector.broadcast %27 : f32 to vector<8x1xf32>
    %29 = arith.addf %26, %28 : vector<8x1xf32>
    %c0_22 = arith.constant 0 : index
    %c0_23 = arith.constant 0 : index
    %30 = vector.load %arg10[%c0_22, %c0_23] : memref<8x1xf32, #tpu.memory_space<vmem>>, vector<8x1xf32>
    tpu.vector_store %arg10[%c0_22, %c0_23], %29 {strides = array<i32>} : memref<8x1xf32, #tpu.memory_space<vmem>>, vector<8x1xf32>,
    return
  }
  func.func @transform_0(%arg0: i32) -> (i32, i32) {
    %c0_i32 = arith.constant 0 : i32
    %c0_i32_0 = arith.constant 0 : i32
    return %arg0, %c0_i32 : i32, i32
  }
  func.func @transform_1(%arg0: i32) -> (i32, i32) {
    %c0_i32 = arith.constant 0 : i32
    %c0_i32_0 = arith.constant 0 : i32
    return %arg0, %c0_i32 : i32, i32
  }
  func.func @transform_2(%arg0: i32) -> (i32, i32) {
    %c0_i32 = arith.constant 0 : i32
    %c0_i32_0 = arith.constant 0 : i32
    %c0_i32_1 = arith.constant 0 : i32
    return %c0_i32, %c0_i32_0 : i32, i32
  }
  func.func @transform_3(%arg0: i32) -> (i32, i32) {
    %c0_i32 = arith.constant 0 : i32
    %c0_i32_0 = arith.constant 0 : i32
    %c0_i32_1 = arith.constant 0 : i32
    return %c0_i32, %c0_i32_0 : i32, i32
  }
  func.func @transform_4(%arg0: i32) -> (i32, i32) {
    %c0_i32 = arith.constant 0 : i32
    %c0_i32_0 = arith.constant 0 : i32
    %c0_i32_1 = arith.constant 0 : i32
    return %c0_i32, %c0_i32_0 : i32, i32
  }
  func.func @transform_5(%arg0: i32) -> (i32, i32) {
    %c0_i32 = arith.constant 0 : i32
    %c0_i32_0 = arith.constant 0 : i32
    %c0_i32_1 = arith.constant 0 : i32
    return %c0_i32, %c0_i32_0 : i32, i32
  }
  func.func @transform_6(%arg0: i32) -> (i32, i32) {
    %c0_i32 = arith.constant 0 : i32
    %c0_i32_0 = arith.constant 0 : i32
    %c0_i32_1 = arith.constant 0 : i32
    return %c0_i32, %c0_i32_0 : i32, i32
  }
  func.func @transform_7(%arg0: i32) -> (i32, i32) {
    %c0_i32 = arith.constant 0 : i32
    %c0_i32_0 = arith.constant 0 : i32
    %c0_i32_1 = arith.constant 0 : i32
    return %c0_i32, %c0_i32_0 : i32, i32
  }
  func.func @transform_8(%arg0: i32) -> (i32, i32) {
    %c0_i32 = arith.constant 0 : i32
    %c0_i32_0 = arith.constant 0 : i32
    %c0_i32_1 = arith.constant 0 : i32
    return %c0_i32, %c0_i32_0 : i32, i32
  }
  func.func @transform_9(%arg0: i32) -> (i32, i32) {
    %c0_i32 = arith.constant 0 : i32
    %c0_i32_0 = arith.constant 0 : i32
    return %arg0, %c0_i32 : i32, i32
  }
}

</mosaic_0001>

<bundles_post_ra>
// kernel: tpu_custom_call.1
= control target key start
LH: loop header
LB: loop body
LE: loop exit
PB: predicated region body
PF: predicated region fallthrough
CT: control target
= control target key end

     0   :  { %15 = vsyncpa [#allocation4], 0  ;;  %s832_s0 = inlined_call_operand.hbm [shape: f32[8,24], index: 0, kind: input, shape index: {}]   ;;  %s833_s1 = inlined_call_operand.hbm [shape: f32[8,6], index: 1, kind: input, shape index: {}]   ;;  %s834_s2 = inlined_call_operand.hbm [shape: bf16[24,256], index: 2, kind: input, shape index: {}]   ;;  %s835_s3 = inlined_call_operand.vmem [shape: bf16[6,256], index: 3, kind: input, shape index: {}]   ;;  %s836_s4 = inlined_call_operand.vmem [shape: f32[1,256], index: 4, kind: input, shape index: {}]   ;;  %s837_s5 = inlined_call_operand.hbm [shape: bf16[256,256], index: 5, kind: input, shape index: {}]   ;;  %s838_s6 = inlined_call_operand.vmem [shape: f32[1,256], index: 6, kind: input, shape index: {}]   ;;  %s839_s7 = inlined_call_operand.vmem [shape: f32[1,256], index: 7, kind: input, shape index: {}]   ;;  %s840_s8 = inlined_call_operand.<no memory space> [shape: f32[1,1], index: 8, kind: input, shape index: {}]   ;;  %s841_s9 = inlined_call_operand.vmem [shape: f32[8,1], index: 9, kind: output, shape index: {}]  }
   0x1   :  { %16 = vsyncpa [#allocation6], 0 }
   0x2   :  { %17 = vsyncpa [#allocation9], 0  ;;  %s709_s30 = smov [#allocation5]   ;;  %s710_s11 = smov [#allocation3]  }
   0x3   :  { %s34_s10 = sshll.u32 %s709_s30, 4  ;;  %s24_s12 = sshll.u32 %s710_s11, 4  ;;  %s35_s10 = int_to_ptr.vmem [resolvable:$true] %s34_s10  ;;  %s25_s12 = int_to_ptr.vmem [resolvable:$true] %s24_s12 }
   0x4   :  { %s615_s15 = scalar_lea.hbm %s833_s1, 128 }
   0x5   :  { %p616_p0 = scmp.ne.s32.totalorder %s833_s1, %s615_s15  ;;  %p619_p1 = scmp.lt.u32.totalorder %s615_s15, %s833_s1 }
   0x7   :  { %p621_p2 = pnand %p619_p1, %p616_p0 }
   0x9   :  { %624 = shalt.err (!%p621_p2)
}
   0xa   :  { %s625_s20 = scalar_lea.vmem %s35_s10, 128  ;;  %p630_p4 = scmp.lt.s32.totalorder %s35_s10, %s35_s10 }
   0xb   :  { %p626_p3 = scmp.ne.s32.totalorder %s35_s10, %s625_s20  ;;  %p631_p5 = scmp.lt.s32.totalorder %s625_s20, %s625_s20 }
   0xd   :  { %p632_p6 = por %p631_p5, %p630_p4 }
   0xf   :  { %p633_p7 = pnand %p632_p6, %p626_p3 }
  0x11   :  { %636 = shalt.err (!%p633_p7)
}
  0x12   :  { %37 = dma.hbm_to_vmem [thread:$0]  %s833_s1, 128, %s35_s10, [#allocation6]  }
  0x13   :  { %s637_s25 = scalar_lea.hbm %s832_s0, 128 }
  0x14   :  { %p638_p8 = scmp.ne.s32.totalorder %s832_s0, %s637_s25  ;;  %p641_p9 = scmp.lt.u32.totalorder %s637_s25, %s832_s0 }
  0x16   :  { %p643_p10 = pnand %p641_p9, %p638_p8 }
  0x18   :  { %646 = shalt.err (!%p643_p10)
}
  0x19   :  { %s647_s30 = scalar_lea.vmem %s25_s12, 128  ;;  %p652_p12 = scmp.lt.s32.totalorder %s25_s12, %s25_s12 }
  0x1a   :  { %p648_p11 = scmp.ne.s32.totalorder %s25_s12, %s647_s30  ;;  %p653_p13 = scmp.lt.s32.totalorder %s647_s30, %s647_s30 }
  0x1c   :  { %p654_p0 = por %p653_p13, %p652_p12 }
  0x1e   :  { %p655_p1 = pnand %p654_p0, %p648_p11 }
  0x20   :  { %658 = shalt.err (!%p655_p1)
}
  0x21   :  { %27 = dma.hbm_to_vmem [thread:$0]  %s832_s0, 128, %s25_s12, [#allocation4]  }
  0x22   :  { %s711_s11 = smov [#allocation7]   ;;  %s659_s16 = scalar_lea.hbm %s834_s2, 384 }
  0x23   :  { %s43_s13 = sshll.u32 %s711_s11, 4  ;;  %p660_p2 = scmp.ne.s32.totalorder %s834_s2, %s659_s16  ;;  %s44_s13 = int_to_ptr.vmem [resolvable:$true] %s43_s13 }
  0x24   :  { %p663_p3 = scmp.lt.u32.totalorder %s659_s16, %s834_s2 }
  0x26   :  { %p665_p4 = pnand %p663_p3, %p660_p2 }
  0x28   :  { %668 = shalt.err (!%p665_p4)
}
  0x29   :  { %s669_s21 = scalar_lea.vmem %s44_s13, 384  ;;  %p674_p6 = scmp.lt.s32.totalorder %s44_s13, %s44_s13 }
  0x2a   :  { %p670_p5 = scmp.ne.s32.totalorder %s44_s13, %s669_s21  ;;  %p675_p7 = scmp.lt.s32.totalorder %s669_s21, %s669_s21 }
  0x2c   :  { %p676_p8 = por %p675_p7, %p674_p6 }
  0x2e   :  { %p677_p9 = pnand %p676_p8, %p670_p5 }
  0x30   :  { %680 = shalt.err (!%p677_p9)
}
  0x31   :  { %s712_s0 = smov 128   ;;  %s713_s12 = smov 8  }
  0x32   :  { %49 = dma.hbm_to_vmem [thread:$0]  %s834_s2, 384, %s44_s13, [#allocation6], %s712_s0, %s712_s0, %s713_s12  }
  0x33   :  { %s714_s24 = smov [#allocation8]   ;;  %s681_s28 = scalar_lea.hbm %s837_s5, 4096 }
  0x34   :  { %s59_s25 = sshll.u32 %s714_s24, 4  ;;  %p682_p10 = scmp.ne.s32.totalorder %s837_s5, %s681_s28  ;;  %s60_s25 = int_to_ptr.vmem [resolvable:$true] %s59_s25 }
  0x35   :  { %p685_p11 = scmp.lt.u32.totalorder %s681_s28, %s837_s5 }
  0x37   :  { %p687_p12 = pnand %p685_p11, %p682_p10 }
  0x39   :  { %690 = shalt.err (!%p687_p12)
}
  0x3a   :  { %s691_s11 = scalar_lea.vmem %s60_s25, 4096  ;;  %p696_p0 = scmp.lt.s32.totalorder %s60_s25, %s60_s25 }
  0x3b   :  { %p692_p13 = scmp.ne.s32.totalorder %s60_s25, %s691_s11  ;;  %p697_p1 = scmp.lt.s32.totalorder %s691_s11, %s691_s11 }
  0x3d   :  { %p698_p2 = por %p697_p1, %p696_p0 }
  0x3f   :  { %p699_p3 = pnand %p698_p2, %p692_p13 }
  0x41   :  { %702 = shalt.err (!%p699_p3)
}
  0x42   :  { %65 = dma.hbm_to_vmem [thread:$0]  %s837_s5, 4096, %s60_s25, [#allocation9], %s712_s0, %s712_s0, %s713_s12  }
  0x43   :  { %703 = dma.done.wait [#allocation4], 128  }
  0x44   :  { %704 = vsyncadd [#allocation4], 4294967168 }
  0x45   :  { %705 = dma.done.wait [#allocation6], 512  }
  0x46   :  { %706 = vsyncadd [#allocation6], 4294966784 }
  0x47   :  { %707 = dma.done.wait [#allocation9], 4096  }
  0x48   :  { %708 = vsyncadd [#allocation9], 4294963200  ;;  %v715_v0 = vmov 0   ;;  %v92_v1 = vld [vmem:[%s835_s3] sm:$0x77]  ;;  %vm102_vm0 = vcmask 1042432   ;;  %v219_v47 = vlaneseq }
  0x49   :  { %141 = vmatprep.mubr.bf16.mxu1 %v715_v0  ;;  %v87_v2 = vld [vmem:[#allocation5] sm:$0xff]  ;;  %v512_v3 = vcombine.high %v92_v1, %v92_v1  ;;  %v511_v4 = vcombine.low %v92_v1, %v92_v1  ;;  %v564_v5 = vld [vmem:[#allocation7 + $0x4] ss:$8 sps:$4 sm:$0xff]   ;;  %v562_v6 = vld [vmem:[#allocation7] ss:$8 sps:$4 sm:$0xff]   ;;  %vm98_vm1 = vcmask 48128  }
  0x4a   :  { %v91_v7 = vld [vmem:[#allocation7 + $0x10] sm:$0xff]  ;;  %v88_v9 = vpack.c.bf16 %v87_v2, %v87_v2  ;;  %v567_v10 = vld [vmem:[#allocation8 + $0x4] ss:$8 sps:$4 sm:$0xff]   ;;  %v569_v11 = vld [vmem:[#allocation8] ss:$8 sps:$4 sm:$0xff]   ;;  %vm169_vm2 = vcmask 1043456  }
  0x4b   :  { %513 = vmatprep.subr.msk.bf16.mxu1 %vm102_vm0, %v512_v3  ;;  %v104_v8 = vsel %vm102_vm0, %v511_v4, 0  ;;  %v570_v12 = vld [vmem:[#allocation8 + $0x14] ss:$8 sps:$4 sm:$0xff]   ;;  %v518_v13 = vcombine.high %v91_v7, %v91_v7  ;;  %v517_v14 = vcombine.low %v91_v7, %v91_v7  ;;  %439 = vmatprep.subr.bf16.mxu0 %v567_v10  ;;  %v572_v15 = vld [vmem:[#allocation8 + $0x10] ss:$8 sps:$4 sm:$0xff]   ;;  %vm165_vm3 = vcmask 195584  }
  0x4c   :  { %110 = vmatpush1.bf16.msra.mxu1 %v104_v8  ;;  %440 = vmatpush1.bf16.msra.mxu0 %v569_v11  ;;  %v573_v16 = vld [vmem:[#allocation8 + $0x24] ss:$8 sps:$4 sm:$0xff]   ;;  %v85_v17 = vld [vmem:[#allocation3] sm:$0xff]  ;;  %v575_v19 = vld [vmem:[#allocation8 + $0x20] ss:$8 sps:$4 sm:$0xff]   ;;  %v220_v48 = vshrl.u32 %v219_v47, 7 }
  0x4d   :  { %176 = vmatprep.subr.bf16.mxu1 %v564_v5  ;;  %441 = vmatprep.subr.bf16.mxu0 %v570_v12  ;;  %v171_v18 = vsel %vm169_vm2, %v517_v14, 0  ;;  %v86_v20 = vpack.c.bf16 %v85_v17, %v85_v17  ;;  %v576_v21 = vld [vmem:[#allocation8 + $0x34] ss:$8 sps:$4 sm:$0xff]   ;;  %v578_v22 = vld [vmem:[#allocation8 + $0x30] ss:$8 sps:$4 sm:$0xff]   ;;  %vm502_vm4 = vcmask 7168  }
  0x4e   :  { %v579_v23 = vld [vmem:[#allocation8 + $0x44] ss:$8 sps:$4 sm:$0xff]   ;;  %v581_v24 = vld [vmem:[#allocation8 + $0x40] ss:$8 sps:$4 sm:$0xff]   ;;  %v582_v25 = vld [vmem:[#allocation8 + $0x54] ss:$8 sps:$4 sm:$0xff]  }
  0x4f   :  { %514 = vmatmul.mubr.msk.bf16.vlgmr.msra.gmra.mrb[0].mxu1 %vm98_vm1, %v88_v9  ;;  %v584_v26 = vld [vmem:[#allocation8 + $0x50] ss:$8 sps:$4 sm:$0xff]   ;;  %v585_v27 = vld [vmem:[#allocation8 + $0x64] ss:$8 sps:$4 sm:$0xff]   ;;  %v587_v28 = vld [vmem:[#allocation8 + $0x60] ss:$8 sps:$4 sm:$0xff]  }
  0x50   :  { %177 = vmatpush1.bf16.msra.mxu1 %v562_v6  ;;  %208 = vmatprep.mubr.bf16.mxu1 %v715_v0  ;;  %v588_v29 = vld [vmem:[#allocation8 + $0x74] ss:$8 sps:$4 sm:$0xff]   ;;  %v590_v30 = vld [vmem:[#allocation8 + $0x70] ss:$8 sps:$4 sm:$0xff]   ;;  %v591_v31 = vld [vmem:[#allocation8 + $0x84] ss:$8 sps:$4 sm:$0xff]  }
  0x51   :  { %519 = vmatprep.subr.msk.bf16.mxu1 %vm169_vm2, %v518_v13  ;;  %442 = vmatpush1.bf16.msra.mxu0 %v572_v15  ;;  %v593_v32 = vld [vmem:[#allocation8 + $0x80] ss:$8 sps:$4 sm:$0xff]   ;;  %v594_v33 = vld [vmem:[#allocation8 + $0x94] ss:$8 sps:$4 sm:$0xff]   ;;  %v596_v34 = vld [vmem:[#allocation8 + $0x90] ss:$8 sps:$4 sm:$0xff]  }
  0x52   :  { %443 = vmatprep.subr.bf16.mxu0 %v573_v16  ;;  %v597_v35 = vld [vmem:[#allocation8 + $0xa4] ss:$8 sps:$4 sm:$0xff]   ;;  %v599_v36 = vld [vmem:[#allocation8 + $0xa0] ss:$8 sps:$4 sm:$0xff]   ;;  %v600_v37 = vld [vmem:[#allocation8 + $0xb4] ss:$8 sps:$4 sm:$0xff]  }
  0x53   :  { %v602_v38 = vld [vmem:[#allocation8 + $0xb0] ss:$8 sps:$4 sm:$0xff]   ;;  %v603_v39 = vld [vmem:[#allocation8 + $0xc4] ss:$8 sps:$4 sm:$0xff]   ;;  %v605_v40 = vld [vmem:[#allocation8 + $0xc0] ss:$8 sps:$4 sm:$0xff]  }
  0x54   :  { %179 = vmatpush1.bf16.msra.mxu1 %v171_v18  ;;  %v606_v41 = vld [vmem:[#allocation8 + $0xd4] ss:$8 sps:$4 sm:$0xff]   ;;  %v608_v42 = vld [vmem:[#allocation8 + $0xd0] ss:$8 sps:$4 sm:$0xff]   ;;  %v609_v43 = vld [vmem:[#allocation8 + $0xe4] ss:$8 sps:$4 sm:$0xff]  }
  0x55   :  { %444 = vmatpush1.bf16.msra.mxu0 %v575_v19  ;;  %v611_v44 = vld [vmem:[#allocation8 + $0xe0] ss:$8 sps:$4 sm:$0xff]   ;;  %v612_v45 = vld [vmem:[#allocation8 + $0xf4] ss:$8 sps:$4 sm:$0xff]   ;;  %v614_v46 = vld [vmem:[#allocation8 + $0xf0] ss:$8 sps:$4 sm:$0xff]  }
  0x56   :  { %445 = vmatprep.subr.bf16.mxu0 %v576_v21  ;;  %v221_v53 = vsub.s32 0, %v220_v48  ;;  %v217_v54 = vld [vmem:[%s836_s4] sm:$0x3]  ;;  %v225_v55 = vsub.s32 1, %v220_v48 }
  0x57   :  { %520 = vmatmul.mubr.msk.bf16.vlgmr.msra.gmra.mrb[4].mxu1 %vm165_vm3, %v86_v20  ;;  %v267_v6 = vld [vmem:[%s838_s6] sm:$0x3] }
  0x58   :  { %v222_v56 = vrot.slane %v217_v54, %v221_v53  ;;  %v226_v58 = vrot.slane %v217_v54, %v225_v55  ;;  %v272_v7 = vrot.slane %v267_v6, %v221_v53  ;;  %v276_v8 = vrot.slane %v267_v6, %v225_v55  ;;  %v482_v9 = vld [vmem:[%s839_s7] sm:$0x3] }
  0x59   :  { %446 = vmatpush1.bf16.msra.mxu0 %v578_v22  ;;  %v487_v13 = vrot.slane %v482_v9, %v221_v53  ;;  %v491_v16 = vrot.slane %v482_v9, %v225_v55 }
  0x5a   :  { %447 = vmatprep.subr.bf16.mxu0 %v579_v23  ;;  %v500_v23 = vstv %s840_s8 }
  0x5d   :  { %448 = vmatpush1.bf16.msra.mxu0 %v581_v24 }
  0x5e   :  { %449 = vmatprep.subr.bf16.mxu0 %v582_v25 }
  0x61   :  { %450 = vmatpush1.bf16.msra.mxu0 %v584_v26 }
  0x62   :  { %451 = vmatprep.subr.bf16.mxu0 %v585_v27 }
  0x65   :  { %452 = vmatpush1.bf16.msra.mxu0 %v587_v28 }
  0x66   :  { %453 = vmatprep.subr.bf16.mxu0 %v588_v29 }
  0x69   :  { %454 = vmatpush1.bf16.msra.mxu0 %v590_v30 }
  0x6a   :  { %455 = vmatprep.subr.bf16.mxu0 %v591_v31 }
  0x6d   :  { %456 = vmatpush1.bf16.msra.mxu0 %v593_v32 }
  0x6e   :  { %457 = vmatprep.subr.bf16.mxu0 %v594_v33 }
  0x71   :  { %458 = vmatpush1.bf16.msra.mxu0 %v596_v34 }
  0x72   :  { %459 = vmatprep.subr.bf16.mxu0 %v597_v35 }
  0x75   :  { %460 = vmatpush1.bf16.msra.mxu0 %v599_v36 }
  0x76   :  { %461 = vmatprep.subr.bf16.mxu0 %v600_v37 }
  0x79   :  { %462 = vmatpush1.bf16.msra.mxu0 %v602_v38 }
  0x7a   :  { %463 = vmatprep.subr.bf16.mxu0 %v603_v39 }
  0x7d   :  { %464 = vmatpush1.bf16.msra.mxu0 %v605_v40 }
  0x7e   :  { %465 = vmatprep.subr.bf16.mxu0 %v606_v41 }
  0x81   :  { %466 = vmatpush1.bf16.msra.mxu0 %v608_v42 }
  0x82   :  { %467 = vmatprep.subr.bf16.mxu0 %v609_v43 }
  0x85   :  { %468 = vmatpush1.bf16.msra.mxu0 %v611_v44 }
  0x86   :  { %469 = vmatprep.subr.bf16.mxu0 %v612_v45 }
  0x89   :  { %470 = vmatpush1.bf16.msra.mxu0 %v614_v46 }
 0x122   :  { %v143_v49 = vpop.f32.mrb[0].mxu1 }
 0x123   :  { %v145_v50 = vpop.f32.mrb[1].mxu1 }
 0x124   :  { %v147_v51 = vpop.f32.mrb[2].mxu1 }
 0x125   :  { %v148_v52 = vpop.f32.mrb[3].mxu1 }
 0x12a   :  { %v210_v57 = vpop.f32.mrb[4].mxu1 }
 0x12b   :  { %v211_v59 = vadd.f32 %v210_v57, %v143_v49  ;;  %v212_v60 = vpop.f32.mrb[5].mxu1 }
 0x12c   :  { %v213_v61 = vadd.f32 %v212_v60, %v145_v50  ;;  %v214_v62 = vpop.f32.mrb[6].mxu1 }
 0x12d   :  { %v229_v63 = vadd.f32 %v222_v56, %v211_v59  ;;  %v215_v0 = vpop.f32.mrb[7].mxu1 }
 0x12e   :  { %v230_v1 = vadd.f32 %v226_v58, %v213_v61 }
 0x12f   :  { %v231_v2 = vmax.f32 %v229_v63, 0.0 }
 0x130   :  { %v232_v3 = vmax.f32 %v230_v1, 0.0 }
 0x131   :  { %v233_v5 = vpack.c.bf16 %v231_v2, %v231_v2 }
 0x132   :  { %v234_v4 = vpack.c.bf16 %v232_v3, %v232_v3 }
 0x134   :  { %471 = vmatprep.mubr.bf16.mxu0 %v234_v4 }
 0x135   :  { %472 = vmatmul.mubr.bf16.vlgmr.msra.gmra.mrb[0].mxu0 %v233_v5 }
 0x208   :  { %v473_v10 = vpop.f32.mrb[0].mxu0 }
 0x209   :  { %v474_v11 = vadd.f32 %v473_v10, %v272_v7  ;;  %v475_v12 = vpop.f32.mrb[1].mxu0 }
 0x20a   :  { %v476_v14 = vadd.f32 %v475_v12, %v276_v8  ;;  %v477_v15 = vpop.f32.mrb[2].mxu0 }
 0x20b   :  { %v480_v17 = vmax.f32 %v474_v11, 0.0  ;;  %v478_v18 = vpop.f32.mrb[3].mxu0 }
 0x20c   :  { %v481_v19 = vmax.f32 %v476_v14, 0.0 }
 0x20d   :  { %v494_v20 = vmul.f32 %v487_v13, %v480_v17 }
 0x20e   :  { %v495_v21 = vmul.f32 %v491_v16, %v481_v19 }
 0x210   :  { %v496_v22 = vadd.f32 %v495_v21, %v494_v20 }
 0x212   :  { %497 = vadd.xlane.f32.xlu0 %v496_v22 }
 0x29f   :  { %v498_v24 = vpop.xlane.xlu0 %497 }
 0x2a0   :  { %v501_v25 = vadd.f32 %v500_v23, %v498_v24 }
 0x2a2   :  { %503 = vst.msk [vmem:[%s841_s9] sm:$0xff] %vm502_vm4, %v501_v25 }
 0x2a3   :  { %508 = vsyncpa [#allocation4], 1 }
 0x2a4   :  { %509 = vsyncpa [#allocation6], 1 }
 0x2a5   :  { %510 = vsyncpa [#allocation9], 1 }

</bundles_post_ra>
